<compile_context>
chip_gen: v5e
topology: v5e:2x2
jax: 0.10.0
libtpu: 0.0.40
codegen_flags: <defaults>
</compile_context>

<pallas_src>
import functools

import jax
import jax.numpy as jnp
from jax.experimental import pallas as pl
from jax.experimental.pallas import tpu as pltpu


_VMEM_LIMIT = 48 * 1024 * 1024  # safe on v5e/v6e (128 MiB) and v7x (64 MiB)


def _pick_tile(dim, target, align):
    """Largest tile <= target that is `align`-aligned and divides dim, or the
    full dim when dim <= target (full-dim blocks are always legal)."""
    if dim <= target:
        return dim
    t = (target // align) * align
    while t >= align:
        if dim % t == 0:
            return t
        t -= align
    return dim


# ----------------------------------------------------------------------------
# Tiled matmul with optional gelu activation and residual-add epilogue
# ----------------------------------------------------------------------------
def _matmul_kernel(x_ref, w_ref, *rest, activation, has_residual):
    if has_residual:
        r_ref, o_ref, acc_ref = rest
    else:
        o_ref, acc_ref = rest

    @pl.when(pl.program_id(2) == 0)
    def _():
        acc_ref[...] = jnp.zeros_like(acc_ref)

    acc_ref[...] += jnp.dot(x_ref[...], w_ref[...],
                            preferred_element_type=jnp.float32)

    @pl.when(pl.program_id(2) == pl.num_programs(2) - 1)
    def _():
        acc = acc_ref[...]
        if activation == "gelu":
            acc = jax.nn.gelu(acc, approximate=False)   # HF Falcon: exact GELU
        if has_residual:
            acc = acc + r_ref[...].astype(jnp.float32)
        o_ref[...] = acc.astype(o_ref.dtype)


def pallas_matmul(x, w, residual=None, activation=None, out_dtype=jnp.float32,
                  tm_target=1024, tn_target=1024, tk_target=512):
    """y = act(x @ w) (+ residual).  x:[M,K], w:[K,N] (bf16 MXU inputs)."""
    M, K = x.shape
    K2, N = w.shape
    assert K == K2
    tm = _pick_tile(M, tm_target, 8)
    tn = _pick_tile(N, tn_target, 128)
    tk = _pick_tile(K, tk_target, 128)
    grid = (M // tm, N // tn, K // tk)

    in_specs = [
        pl.BlockSpec((tm, tk), lambda i, j, k: (i, k)),
        pl.BlockSpec((tk, tn), lambda i, j, k: (k, j)),
    ]
    inputs = [x, w]
    if residual is not None:
        assert residual.shape == (M, N)
        in_specs.append(pl.BlockSpec((tm, tn), lambda i, j, k: (i, j)))
        inputs.append(residual)

    return pl.pallas_call(
        functools.partial(_matmul_kernel, activation=activation,
                          has_residual=residual is not None),
        out_shape=jax.ShapeDtypeStruct((M, N), out_dtype),
        grid=grid,
        in_specs=in_specs,
        out_specs=pl.BlockSpec((tm, tn), lambda i, j, k: (i, j)),
        scratch_shapes=[pltpu.VMEM((tm, tn), jnp.float32)],
        compiler_params=pltpu.CompilerParams(
            dimension_semantics=("parallel", "parallel", "arbitrary"),
            vmem_limit_bytes=_VMEM_LIMIT),
    )(*inputs)


# ----------------------------------------------------------------------------
# Row-tiled LayerNorm producing 1..n outputs (fused ln_attn / ln_mlp)
# ----------------------------------------------------------------------------
def _ln_kernel(*refs, eps, n_out):
    x_ref = refs[0]
    gb_refs = refs[1:1 + 2 * n_out]
    out_refs = refs[1 + 2 * n_out:]
    x = x_ref[...].astype(jnp.float32)
    mean = jnp.mean(x, axis=-1, keepdims=True)
    xc = x - mean
    var = jnp.mean(xc * xc, axis=-1, keepdims=True)
    xn = xc * jax.lax.rsqrt(var + eps)
    for i in range(n_out):
        g = gb_refs[2 * i][...]
        b = gb_refs[2 * i + 1][...]
        out_refs[i][...] = (xn * g + b).astype(out_refs[i].dtype)


def pallas_layernorm(x, *gammas_betas, eps=1e-5, out_dtype=jnp.bfloat16,
                     tm_target=512):
    """Row-wise LayerNorm; pass (g1, b1[, g2, b2, ...]) for fused outputs."""
    M, H = x.shape
    n_out = len(gammas_betas) // 2
    assert len(gammas_betas) == 2 * n_out and n_out >= 1
    tm = _pick_tile(M, tm_target, 8)
    grid = (M // tm,)
    in_specs = [pl.BlockSpec((tm, H), lambda i: (i, 0))]
    in_specs += [pl.BlockSpec((1, H), lambda i: (0, 0))] * (2 * n_out)
    out_shape = tuple(jax.ShapeDtypeStruct((M, H), out_dtype)
                      for _ in range(n_out))
    out_specs = tuple(pl.BlockSpec((tm, H), lambda i: (i, 0))
                      for _ in range(n_out))
    outs = pl.pallas_call(
        functools.partial(_ln_kernel, eps=eps, n_out=n_out),
        out_shape=out_shape,
        grid=grid,
        in_specs=in_specs,
        out_specs=out_specs,
        compiler_params=pltpu.CompilerParams(
            dimension_semantics=("parallel",),
            vmem_limit_bytes=_VMEM_LIMIT),
    )(x, *gammas_betas)
    return outs[0] if n_out == 1 else outs


# ----------------------------------------------------------------------------
# Flash-style causal GQA attention (KV-tiled online softmax, group of q heads
# sharing one KV head per grid step)
# ----------------------------------------------------------------------------
def _flash_attn_kernel(q_ref, k_ref, v_ref, o_ref, m_ref, l_ref, acc_ref,
                       *, scale, g, tq, tkv, hd):
    qi = pl.program_id(2)
    ki = pl.program_id(3)

    @pl.when(ki == 0)
    def _():
        m_ref[...] = jnp.full_like(m_ref, -1e30)
        l_ref[...] = jnp.zeros_like(l_ref)
        acc_ref[...] = jnp.zeros_like(acc_ref)

    q_start = qi * tq
    k_start = ki * tkv

    # Skip KV blocks that are entirely in the causal-masked future.  The K/V
    # index_map also clamps these blocks so their DMA is elided entirely.
    @pl.when(k_start <= q_start + tq - 1)
    def _():
        q = q_ref[0, 0].reshape(g * tq, hd) * scale        # (g*tq, hd) bf16
        k = k_ref[0, 0]                                    # (tkv, hd)  bf16
        v = v_ref[0, 0]                                    # (tkv, hd)  bf16

        s = jax.lax.dot_general(
            q, k, (((1,), (1,)), ((), ())),
            preferred_element_type=jnp.float32)            # (g*tq, tkv)

        row = q_start + (jax.lax.broadcasted_iota(jnp.int32, (g * tq, tkv), 0)
                         % tq)
        col = k_start + jax.lax.broadcasted_iota(jnp.int32, (g * tq, tkv), 1)
        s = jnp.where(col <= row, s, -1e30)

        m_prev = m_ref[...]
        m_new = jnp.maximum(m_prev, jnp.max(s, axis=-1, keepdims=True))
        alpha = jnp.exp(m_prev - m_new)
        p = jnp.exp(s - m_new)
        l_ref[...] = alpha * l_ref[...] + jnp.sum(p, axis=-1, keepdims=True)
        acc_ref[...] = alpha * acc_ref[...] + jax.lax.dot_general(
            p.astype(v.dtype), v, (((1,), (0,)), ((), ())),
            preferred_element_type=jnp.float32)
        m_ref[...] = m_new

    @pl.when(ki == pl.num_programs(3) - 1)
    def _():
        out = acc_ref[...] * pl.reciprocal(l_ref[...], approx=True)
        o_ref[...] = out.astype(o_ref.dtype).reshape(1, 1, g, tq, hd)


def pallas_flash_attention(q, k, v, tq_target=256, tkv_target=256):
    """q:[B,nKV,g,S,hd], k/v:[B,nKV,S,hd] (bf16) -> [B,nKV,g,S,hd] bf16."""
    B, nKV, g, S, hd = q.shape
    tq = _pick_tile(S, tq_target, 8)
    tkv = _pick_tile(S, tkv_target, 8)
    scale = 1.0 / (hd ** 0.5)
    grid = (B, nKV, S // tq, S // tkv)

    def q_map(b, h, qi, ki):
        return (b, h, 0, qi, 0)

    def kv_map(b, h, qi, ki):
        # Clamp the KV block index to the causal frontier: for fully masked
        # future blocks the block index repeats, so Pallas skips the DMA.
        kmax = (qi * tq + tq - 1) // tkv
        return (b, h, jnp.minimum(ki, kmax), 0)

    return pl.pallas_call(
        functools.partial(_flash_attn_kernel, scale=scale, g=g, tq=tq,
                          tkv=tkv, hd=hd),
        out_shape=jax.ShapeDtypeStruct((B, nKV, g, S, hd), jnp.bfloat16),
        grid=grid,
        in_specs=[
            pl.BlockSpec((1, 1, g, tq, hd), q_map),
            pl.BlockSpec((1, 1, tkv, hd), kv_map),
            pl.BlockSpec((1, 1, tkv, hd), kv_map),
        ],
        out_specs=pl.BlockSpec((1, 1, g, tq, hd), q_map),
        scratch_shapes=[
            pltpu.VMEM((g * tq, 1), jnp.float32),   # running max
            pltpu.VMEM((g * tq, 1), jnp.float32),   # running sum
            pltpu.VMEM((g * tq, hd), jnp.float32),  # output accumulator
        ],
        compiler_params=pltpu.CompilerParams(
            dimension_semantics=("parallel", "parallel", "parallel", "arbitrary"),
            vmem_limit_bytes=_VMEM_LIMIT),
    )(q, k, v)


# ----------------------------------------------------------------------------
# Glue: RoPE, parameters, model
# ----------------------------------------------------------------------------
def rope_cache(seq_len, head_dim, base=10000.0):
    inv_freq = 1.0 / (base ** (jnp.arange(0, head_dim, 2, dtype=jnp.float32)
                               / head_dim))
    t = jnp.arange(seq_len, dtype=jnp.float32)
    freqs = jnp.outer(t, inv_freq)                   # (S, hd/2)
    emb = jnp.concatenate([freqs, freqs], axis=-1)   # (S, hd)
    return jnp.cos(emb), jnp.sin(emb)


def apply_rope(x, cos, sin):
    # x: [..., S, hd]; cos/sin: [S, hd]
    # TODO(synk): RoPE stays at the JAX level (fused elementwise by XLA);
    # an in-kernel pltpu.roll variant would save one HBM round-trip per layer.
    hd = x.shape[-1]
    x = x.astype(jnp.float32)
    x1, x2 = x[..., : hd // 2], x[..., hd // 2:]
    rot = jnp.concatenate([-x2, x1], axis=-1)
    return x * cos + rot * sin


class FalconConfig:
    def __init__(self, vocab=64, hidden=32, n_heads=4, n_kv_heads=2, n_layers=2):
        self.vocab = vocab
        self.hidden = hidden
        self.n_heads = n_heads
        self.n_kv_heads = n_kv_heads
        self.n_layers = n_layers
        self.head_dim = hidden // n_heads


def init_params(key, cfg):
    def normal(k, shape):
        return 0.02 * jax.random.normal(k, shape, dtype=jnp.float32)

    H, hd = cfg.hidden, cfg.head_dim
    keys = jax.random.split(key, 2 + cfg.n_layers)
    params = {
        "wte": normal(keys[0], (cfg.vocab, H)),
        "lm_head": normal(keys[1], (H, cfg.vocab)),
        "ln_f_g": jnp.ones((1, H), jnp.float32),
        "ln_f_b": jnp.zeros((1, H), jnp.float32),
        "layers": [],
    }
    for l in range(cfg.n_layers):
        lk = jax.random.split(keys[2 + l], 6)
        params["layers"].append({
            "ln_attn_g": jnp.ones((1, H), jnp.float32),
            "ln_attn_b": jnp.zeros((1, H), jnp.float32),
            "ln_mlp_g": jnp.ones((1, H), jnp.float32),
            "ln_mlp_b": jnp.zeros((1, H), jnp.float32),
            "wq": normal(lk[0], (H, cfg.n_heads * hd)),
            "wk": normal(lk[1], (H, cfg.n_kv_heads * hd)),
            "wv": normal(lk[2], (H, cfg.n_kv_heads * hd)),
            "wo": normal(lk[3], (cfg.n_heads * hd, H)),
            "w_h_to_4h": normal(lk[4], (H, 4 * H)),
            "w_4h_to_h": normal(lk[5], (4 * H, H)),
        })
    return params


class PallasFalconCausalLM:
    """Pallas re-implementation of PytorchFalconCausalLM.forward."""

    def __init__(self, params, cfg, num_layers=None):
        self.cfg = cfg
        layers = params["layers"]
        if num_layers is not None:
            layers = layers[:num_layers]
            self.cfg = FalconConfig(cfg.vocab, cfg.hidden, cfg.n_heads,
                                    cfg.n_kv_heads, num_layers)
        # Kernel-ready weights: QKV fused along N, all MXU inputs cast to bf16.
        self.wte = params["wte"].astype(jnp.float32)
        self.lm_head = params["lm_head"].astype(jnp.bfloat16)
        self.ln_f_g = params["ln_f_g"]
        self.ln_f_b = params["ln_f_b"]
        self.layers = []
        for l in layers:
            self.layers.append({
                "ln_attn_g": l["ln_attn_g"], "ln_attn_b": l["ln_attn_b"],
                "ln_mlp_g": l["ln_mlp_g"], "ln_mlp_b": l["ln_mlp_b"],
                "wqkv": jnp.concatenate([l["wq"], l["wk"], l["wv"]],
                                        axis=1).astype(jnp.bfloat16),
                "wo": l["wo"].astype(jnp.bfloat16),
                "w_h_to_4h": l["w_h_to_4h"].astype(jnp.bfloat16),
                "w_4h_to_h": l["w_4h_to_h"].astype(jnp.bfloat16),
            })

    def forward(self, input_ids, past_key_values=None, use_cache=True):
        cfg = self.cfg
        B, S = input_ids.shape
        H, nH, nKV, hd = cfg.hidden, cfg.n_heads, cfg.n_kv_heads, cfg.head_dim
        g = nH // nKV

        # TODO(synk): only the prefill path (past_key_values=None) is implemented;
        # KV-cache concatenation for incremental decode is not supported here.
        assert past_key_values is None

        hidden = jnp.take(self.wte, input_ids, axis=0)          # (B, S, H) f32
        cos, sin = rope_cache(S, hd)
        presents = []

        x2d = hidden.reshape(B * S, H)
        for layer in self.layers:
            # ---- fused LayerNorms (one read of x2d, two bf16 outputs) ----
            ln_attn, ln_mlp = pallas_layernorm(
                x2d, layer["ln_attn_g"], layer["ln_attn_b"],
                layer["ln_mlp_g"], layer["ln_mlp_b"])

            # ---- fused QKV projection ----
            qkv = pallas_matmul(ln_attn, layer["wqkv"], out_dtype=jnp.bfloat16)
            q = qkv[:, : nH * hd]
            k = qkv[:, nH * hd: (nH + nKV) * hd]
            v = qkv[:, (nH + nKV) * hd:]

            q = (q.reshape(B, S, nH, hd).transpose(0, 2, 1, 3)
                  .reshape(B, nKV, g, S, hd))
            k = k.reshape(B, S, nKV, hd).transpose(0, 2, 1, 3)   # (B,nKV,S,hd)
            v = v.reshape(B, S, nKV, hd).transpose(0, 2, 1, 3)

            q = apply_rope(q, cos, sin).astype(jnp.bfloat16)
            k = apply_rope(k, cos, sin).astype(jnp.bfloat16)
            v = v.astype(jnp.bfloat16)

            # ---- flash-style causal GQA attention ----
            attn = pallas_flash_attention(q, k, v)               # (B,nKV,g,S,hd)
            attn2d = (attn.reshape(B, nH, S, hd).transpose(0, 2, 1, 3)
                           .reshape(B * S, H))

            # ---- output proj + MLP, residual adds folded into epilogues ----
            attn_res = pallas_matmul(attn2d, layer["wo"], residual=x2d,
                                     out_dtype=jnp.float32)
            h4 = pallas_matmul(ln_mlp, layer["w_h_to_4h"],
                               activation="gelu", out_dtype=jnp.bfloat16)
            x2d = pallas_matmul(h4, layer["w_4h_to_h"], residual=attn_res,
                                out_dtype=jnp.float32)

            if use_cache:
                presents.append((k, v))                          # bf16 KV cache

        lnf = pallas_layernorm(x2d, self.ln_f_g, self.ln_f_b)
        logits = pallas_matmul(lnf, self.lm_head,
                               out_dtype=jnp.float32).reshape(B, S, cfg.vocab)

        if use_cache:
            return (logits, tuple(presents))   # return_dict=False, use_cache=True
        return (logits,)

    __call__ = forward


# ----------------------------------------------------------------------------
if __name__ == "__main__":
    key = jax.random.PRNGKey(0)
    cfg = FalconConfig(vocab=64, hidden=32, n_heads=4, n_kv_heads=2, n_layers=2)

    pkey, ikey = jax.random.split(key)
    params = init_params(pkey, cfg)
    input_ids = jax.random.randint(ikey, (2, 8), 0, cfg.vocab, dtype=jnp.int32)

    model = PallasFalconCausalLM(params, cfg, num_layers=2)
    logits, presents = model(input_ids, past_key_values=None, use_cache=True)

    jax.block_until_ready(logits)
    jax.block_until_ready(presents)

    assert logits.shape == (2, 8, cfg.vocab)
    assert logits.dtype == jnp.float32
    assert len(presents) == cfg.n_layers
    assert presents[0][0].shape == (2, cfg.n_kv_heads, 8, cfg.head_dim)
    assert bool(jnp.all(jnp.isfinite(logits)))
    print("KERNEL_OK")
</pallas_src>

<mosaic_0001>
module attributes {stable_mosaic.version = 11 : i64} {
  func.func @_ln_kernel(%arg0: i32, %arg1: memref<16x32xf32, #tpu.memory_space<vmem>>, %arg2: memref<1x32xf32, #tpu.memory_space<vmem>>, %arg3: memref<1x32xf32, #tpu.memory_space<vmem>>, %arg4: memref<1x32xf32, #tpu.memory_space<vmem>>, %arg5: memref<1x32xf32, #tpu.memory_space<vmem>>, %arg6: memref<16x32xbf16, #tpu.memory_space<vmem>>, %arg7: memref<16x32xbf16, #tpu.memory_space<vmem>>) attributes {dimension_semantics = [#tpu.dimension_semantics<parallel>], iteration_bounds = array<i64: 1>, scalar_prefetch = 0 : i64, scratch_operands = 0 : i64, tpu.core_type = #tpu.core_type<tc>, window_params = [{transform_indices = @transform_0, window_bounds = array<i64: 16, 32>}, {pipeline_mode = #tpu.pipeline_mode<synchronous>, transform_indices = @transform_1, window_bounds = array<i64: 1, 32>}, {pipeline_mode = #tpu.pipeline_mode<synchronous>, transform_indices = @transform_2, window_bounds = array<i64: 1, 32>}, {pipeline_mode = #tpu.pipeline_mode<synchronous>, transform_indices = @transform_3, window_bounds = array<i64: 1, 32>}, {pipeline_mode = #tpu.pipeline_mode<synchronous>, transform_indices = @transform_4, window_bounds = array<i64: 1, 32>}, {transform_indices = @transform_5, window_bounds = array<i64: 16, 32>}, {transform_indices = @transform_6, window_bounds = array<i64: 16, 32>}]} {
    %c0 = arith.constant 0 : index
    %c0_0 = arith.constant 0 : index
    %0 = vector.load %arg1[%c0, %c0_0] : memref<16x32xf32, #tpu.memory_space<vmem>>, vector<16x32xf32>
    %cst = arith.constant dense<0.000000e+00> : vector<16xf32>
    %1 = vector.multi_reduction <add>, %0, %cst [1] : vector<16x32xf32> to vector<16xf32>
    %2 = vector.shape_cast %1 : vector<16xf32> to vector<16x1xf32>
    %cst_1 = arith.constant 3.200000e+01 : f32
    %3 = vector.broadcast %cst_1 : f32 to vector<16x1xf32>
    %4 = arith.divf %2, %3 : vector<16x1xf32>
    %5 = vector.broadcast %4 : vector<16x1xf32> to vector<16x32xf32>
    %6 = arith.subf %0, %5 : vector<16x32xf32>
    %7 = arith.mulf %6, %6 : vector<16x32xf32>
    %cst_2 = arith.constant dense<0.000000e+00> : vector<16xf32>
    %8 = vector.multi_reduction <add>, %7, %cst_2 [1] : vector<16x32xf32> to vector<16xf32>
    %9 = vector.shape_cast %8 : vector<16xf32> to vector<16x1xf32>
    %cst_3 = arith.constant 3.200000e+01 : f32
    %10 = vector.broadcast %cst_3 : f32 to vector<16x1xf32>
    %11 = arith.divf %9, %10 : vector<16x1xf32>
    %cst_4 = arith.constant 9.99999974E-6 : f32
    %12 = vector.broadcast %cst_4 : f32 to vector<16x1xf32>
    %13 = arith.addf %11, %12 : vector<16x1xf32>
    %14 = math.rsqrt %13 : vector<16x1xf32>
    %15 = vector.broadcast %14 : vector<16x1xf32> to vector<16x32xf32>
    %16 = arith.mulf %6, %15 : vector<16x32xf32>
    %c0_5 = arith.constant 0 : index
    %c0_6 = arith.constant 0 : index
    %17 = vector.load %arg2[%c0_5, %c0_6] : memref<1x32xf32, #tpu.memory_space<vmem>>, vector<1x32xf32>
    %c0_7 = arith.constant 0 : index
    %c0_8 = arith.constant 0 : index
    %18 = vector.load %arg3[%c0_7, %c0_8] : memref<1x32xf32, #tpu.memory_space<vmem>>, vector<1x32xf32>
    %19 = vector.broadcast %17 : vector<1x32xf32> to vector<16x32xf32>
    %20 = arith.mulf %16, %19 : vector<16x32xf32>
    %21 = vector.broadcast %18 : vector<1x32xf32> to vector<16x32xf32>
    %22 = arith.addf %20, %21 : vector<16x32xf32>
    %23 = arith.truncf %22 : vector<16x32xf32> to vector<16x32xbf16>
    %c0_9 = arith.constant 0 : index
    %c0_10 = arith.constant 0 : index
    %24 = vector.load %arg6[%c0_9, %c0_10] : memref<16x32xbf16, #tpu.memory_space<vmem>>, vector<16x32xbf16>
    tpu.vector_store %arg6[%c0_9, %c0_10], %23 {strides = array<i32>} : memref<16x32xbf16, #tpu.memory_space<vmem>>, vector<16x32xbf16>,
    %c0_11 = arith.constant 0 : index
    %c0_12 = arith.constant 0 : index
    %25 = vector.load %arg4[%c0_11, %c0_12] : memref<1x32xf32, #tpu.memory_space<vmem>>, vector<1x32xf32>
    %c0_13 = arith.constant 0 : index
    %c0_14 = arith.constant 0 : index
    %26 = vector.load %arg5[%c0_13, %c0_14] : memref<1x32xf32, #tpu.memory_space<vmem>>, vector<1x32xf32>
    %27 = vector.broadcast %25 : vector<1x32xf32> to vector<16x32xf32>
    %28 = arith.mulf %16, %27 : vector<16x32xf32>
    %29 = vector.broadcast %26 : vector<1x32xf32> to vector<16x32xf32>
    %30 = arith.addf %28, %29 : vector<16x32xf32>
    %31 = arith.truncf %30 : vector<16x32xf32> to vector<16x32xbf16>
    %c0_15 = arith.constant 0 : index
    %c0_16 = arith.constant 0 : index
    %32 = vector.load %arg7[%c0_15, %c0_16] : memref<16x32xbf16, #tpu.memory_space<vmem>>, vector<16x32xbf16>
    tpu.vector_store %arg7[%c0_15, %c0_16], %31 {strides = array<i32>} : memref<16x32xbf16, #tpu.memory_space<vmem>>, vector<16x32xbf16>,
    return
  }
  func.func @transform_0(%arg0: i32) -> (i32, i32) {
    %c0_i32 = arith.constant 0 : i32
    %c0_i32_0 = arith.constant 0 : i32
    return %arg0, %c0_i32 : i32, i32
  }
  func.func @transform_1(%arg0: i32) -> (i32, i32) {
    %c0_i32 = arith.constant 0 : i32
    %c0_i32_0 = arith.constant 0 : i32
    %c0_i32_1 = arith.constant 0 : i32
    return %c0_i32, %c0_i32_0 : i32, i32
  }
  func.func @transform_2(%arg0: i32) -> (i32, i32) {
    %c0_i32 = arith.constant 0 : i32
    %c0_i32_0 = arith.constant 0 : i32
    %c0_i32_1 = arith.constant 0 : i32
    return %c0_i32, %c0_i32_0 : i32, i32
  }
  func.func @transform_3(%arg0: i32) -> (i32, i32) {
    %c0_i32 = arith.constant 0 : i32
    %c0_i32_0 = arith.constant 0 : i32
    %c0_i32_1 = arith.constant 0 : i32
    return %c0_i32, %c0_i32_0 : i32, i32
  }
  func.func @transform_4(%arg0: i32) -> (i32, i32) {
    %c0_i32 = arith.constant 0 : i32
    %c0_i32_0 = arith.constant 0 : i32
    %c0_i32_1 = arith.constant 0 : i32
    return %c0_i32, %c0_i32_0 : i32, i32
  }
  func.func @transform_5(%arg0: i32) -> (i32, i32) {
    %c0_i32 = arith.constant 0 : i32
    %c0_i32_0 = arith.constant 0 : i32
    return %arg0, %c0_i32 : i32, i32
  }
  func.func @transform_6(%arg0: i32) -> (i32, i32) {
    %c0_i32 = arith.constant 0 : i32
    %c0_i32_0 = arith.constant 0 : i32
    return %arg0, %c0_i32 : i32, i32
  }
}

</mosaic_0001>

<bundles_post_ra>
// kernel: tpu_custom_call.1
= control target key start
LH: loop header
LB: loop body
LE: loop exit
PB: predicated region body
PF: predicated region fallthrough
CT: control target
= control target key end

     0   :  { %12 = vsyncpa [#allocation3], 0  ;;  %s375_s0 = inlined_call_operand.hbm [shape: f32[16,32], index: 0, kind: input, shape index: {}]   ;;  %s376_s1 = inlined_call_operand.hbm [shape: f32[1,32], index: 1, kind: input, shape index: {}]   ;;  %s377_s2 = inlined_call_operand.vmem [shape: f32[1,32], index: 2, kind: input, shape index: {}]   ;;  %s378_s3 = inlined_call_operand.vmem [shape: f32[1,32], index: 3, kind: input, shape index: {}]   ;;  %s379_s4 = inlined_call_operand.vmem [shape: f32[1,32], index: 4, kind: input, shape index: {}]   ;;  %s380_s5 = inlined_call_operand.hbm [shape: bf16[16,32], index: 5, kind: output, shape index: {0}]   ;;  %s381_s6 = inlined_call_operand.hbm [shape: bf16[16,32], index: 6, kind: output, shape index: {1}]  }
   0x1   :  { %13 = vsyncpa [#allocation6], 0 }
   0x2   :  { %14 = vsyncpa [#allocation4], 0 }
   0x3   :  { %15 = vsyncpa [#allocation9], 0  ;;  %s20_s23 = sshll.u32 %s375_s0, 4  ;;  %s302_s24 = smov [#allocation2]   ;;  %s21_s23 = int_to_ptr.hbm [resolvable:$true] %s20_s23 }
   0x4   :  { %s22_s25 = sshll.u32 %s302_s24, 4  ;;  %s34_s28 = sshll.u32 %s376_s1, 4  ;;  %s23_s25 = int_to_ptr.vmem [resolvable:$true] %s22_s25  ;;  %s35_s28 = int_to_ptr.hbm [resolvable:$true] %s34_s28 }
   0x5   :  { %s303_s29 = smov 128   ;;  %s304_s30 = smov 8  }
   0x6   :  { %28 = dma.hbm_to_vmem [thread:$0]  %s21_s23, 256, %s23_s25, [#allocation3], %s303_s29, %s303_s29, %s304_s30  }
   0x7   :  { %s305_s7 = smov [#allocation5]  }
   0x8   :  { %s36_s8 = sshll.u32 %s305_s7, 4  ;;  %s37_s8 = int_to_ptr.vmem [resolvable:$true] %s36_s8 }
   0x9   :  { %39 = dma.hbm_to_vmem [thread:$0]  %s35_s28, 16, %s37_s8, [#allocation6]  }
   0xa   :  { %294 = dma.done.wait [#allocation3], 256  }
   0xb   :  { %295 = vsyncadd [#allocation3], 4294967040 }
   0xc   :  { %296 = dma.done.wait [#allocation6], 16  }
   0xd   :  { %297 = vsyncadd [#allocation6], 4294967280  ;;  %vm56_vm0 = vcmask 261120   ;;  %v54_v0 = vld [vmem:[#allocation2] sm:$0xff]  ;;  %v55_v2 = vld [vmem:[#allocation2 + $0x8] sm:$0xff]  ;;  %v306_v4 = vmov 32.0  }
   0xe   :  { %v57_v1 = vsel %vm56_vm0, %v54_v0, 0.0  ;;  %v60_v3 = vsel %vm56_vm0, %v55_v2, 0.0  ;;  %192 = vrcp.f32 %v306_v4  ;;  %v188_v35 = vld [vmem:[#allocation5] ss:$0 sm:$0xff]  ;;  %v190_v36 = vld [vmem:[%s378_s3] ss:$0 sm:$0xff] }
   0xf   :  { %58 = vadd.xlane.f32.xlu0 %v57_v1  ;;  %v189_v39 = vld [vmem:[%s377_s2] ss:$0 sm:$0xff]  ;;  %vm122_vm7 = vcmask 257024   ;;  %s307_s2 = smov [#allocation7]   ;;  %s147_s14 = sshll.u32 %s380_s5, 4  ;;  %s148_s14 = int_to_ptr.hbm [resolvable:$true] %s147_s14 }
  0x10   :  { %v191_v40 = vld [vmem:[%s379_s4] ss:$0 sm:$0xff]  ;;  %s145_s3 = sshll.u32 %s307_s2, 4  ;;  %s308_s15 = smov [#allocation8]   ;;  %s146_s3 = int_to_ptr.vmem [resolvable:$true] %s145_s3 }
  0x11   :  { %s158_s16 = sshll.u32 %s308_s15, 4  ;;  %s160_s19 = sshll.u32 %s381_s6, 4  ;;  %s159_s16 = int_to_ptr.vmem [resolvable:$true] %s158_s16  ;;  %s161_s19 = int_to_ptr.hbm [resolvable:$true] %s160_s19 }
  0x12   :  { %s309_s20 = smov 64   ;;  %s310_s21 = smov 4  }
  0x14   :  { %v193_v5 = vpop.eup %192 }
  0x15   :  { %v64_v6 = vmul.f32 32.0, %v193_v5  ;;  %vm68_vm1 = vweird.f32 %v193_v5 }
  0x17   :  { %61 = vadd.xlane.f32.xlu0 %v60_v3  ;;  %v65_v7 = vsub.f32 1.0, %v64_v6 }
  0x19   :  { %v66_v8 = vmul.f32 %v193_v5, %v65_v7 }
  0x1b   :  { %v67_v9 = vadd.f32 %v193_v5, %v66_v8 }
  0x1d   :  { %v69_v10 = vsel %vm68_vm1, %v193_v5, %v67_v9 }
  0x82   :  { %v59_v11 = vpop.xlane.xlu0 %58 }
  0x83   :  { %v70_v12 = vmul.f32 %v69_v10, %v59_v11 }
  0x85   :  { %v72_v13 = vsub.f32 %v54_v0, %v70_v12 }
  0x87   :  { %v74_v14 = vmul.f32 %v72_v13, %v72_v13 }
  0x89   :  { %v76_v15 = vsel %vm56_vm0, %v74_v14, 0.0 }
  0x8a   :  { %77 = vadd.xlane.f32.xlu1 %v76_v15  ;;  %v62_v16 = vpop.xlane.xlu0 %61 }
  0x8b   :  { %v71_v17 = vmul.f32 %v69_v10, %v62_v16 }
  0x8d   :  { %v73_v18 = vsub.f32 %v55_v2, %v71_v17 }
  0x8f   :  { %v75_v19 = vmul.f32 %v73_v18, %v73_v18 }
  0x91   :  { %v79_v20 = vsel %vm56_vm0, %v75_v19, 0.0 }
  0x92   :  { %80 = vadd.xlane.f32.xlu1 %v79_v20 }
  0xfd   :  { %v78_v21 = vpop.xlane.xlu1 %77 }
  0xfe   :  { %v82_v22 = vmul.f32 %v78_v21, %v69_v10 }
 0x100   :  { %v84_v23 = vadd.f32 1e-05, %v82_v22 }
 0x102   :  { %194 = vrsqrt.f32 %v84_v23  ;;  %vm92_vm3 = vweird.f32 %v84_v23 }
 0x105   :  { %v81_v24 = vpop.xlane.xlu1 %80 }
 0x106   :  { %v83_v25 = vmul.f32 %v81_v24, %v69_v10 }
 0x108   :  { %v195_v26 = vpop.eup %194  ;;  %v85_v27 = vadd.f32 1e-05, %v83_v25 }
 0x109   :  { %v87_v28 = vmul.f32 %v195_v26, %v84_v23  ;;  %vm93_vm2 = vweird.f32 %v195_v26 }
 0x10a   :  { %196 = vrsqrt.f32 %v85_v27  ;;  %vm94_vm4 = vmor %vm92_vm3, %vm93_vm2  ;;  %vm102_vm6 = vweird.f32 %v85_v27 }
 0x10b   :  { %v88_v29 = vmul.f32 %v195_v26, %v87_v28 }
 0x10d   :  { %v89_v30 = vmul.f32 0.5, %v88_v29 }
 0x10f   :  { %v90_v31 = vsub.f32 1.5, %v89_v30 }
 0x110   :  { %v197_v32 = vpop.eup %196 }
 0x111   :  { %v91_v33 = vmul.f32 %v195_v26, %v90_v31  ;;  %v97_v34 = vmul.f32 %v197_v32, %v85_v27  ;;  %vm103_vm5 = vweird.f32 %v197_v32 }
 0x112   :  { %vm104_vm8 = vmor %vm102_vm6, %vm103_vm5 }
 0x113   :  { %v95_v37 = vsel %vm94_vm4, %v195_v26, %v91_v33  ;;  %v98_v38 = vmul.f32 %v197_v32, %v97_v34 }
 0x114   :  { %v106_v41 = vmul.f32 %v95_v37, %v72_v13 }
 0x115   :  { %v99_v42 = vmul.f32 0.5, %v98_v38 }
 0x116   :  { %v113_v43 = vmul.f32 %v188_v35, %v106_v41  ;;  %v130_v44 = vmul.f32 %v190_v36, %v106_v41 }
 0x117   :  { %v100_v45 = vsub.f32 1.5, %v99_v42 }
 0x118   :  { %v118_v46 = vadd.f32 %v189_v39, %v113_v43  ;;  %v135_v47 = vadd.f32 %v191_v40, %v130_v44 }
 0x119   :  { %v101_v48 = vmul.f32 %v197_v32, %v100_v45 }
 0x11a   :  { %v120_v49 = vpack.c.bf16 %v118_v46, %v118_v46  ;;  %v137_v50 = vpack.c.bf16 %v135_v47, %v135_v47 }
 0x11b   :  { %v105_v51 = vsel %vm104_vm8, %v197_v32, %v101_v48 }
 0x11c   :  { %v107_v52 = vmul.f32 %v105_v51, %v73_v18  ;;  %123 = vst.msk [vmem:[#allocation7] sm:$0xf] %vm122_vm7, %v120_v49 }
 0x11d   :  { %139 = vst.msk [vmem:[#allocation8] sm:$0xf] %vm122_vm7, %v137_v50 }
 0x11e   :  { %v114_v53 = vmul.f32 %v188_v35, %v107_v52  ;;  %v131_v54 = vmul.f32 %v190_v36, %v107_v52 }
 0x120   :  { %v119_v55 = vadd.f32 %v189_v39, %v114_v53  ;;  %v136_v56 = vadd.f32 %v191_v40, %v131_v54 }
 0x122   :  { %v121_v57 = vpack.c.bf16 %v119_v55, %v119_v55  ;;  %v138_v58 = vpack.c.bf16 %v136_v56, %v136_v56 }
 0x124   :  { %124 = vst.msk [vmem:[#allocation7 + $0x4] sm:$0xf] %vm122_vm7, %v121_v57 }
 0x125   :  { %153 = dma.vmem_to_hbm [thread:$0]  %s146_s3, 128, %s148_s14, [#allocation4], %s309_s20, %s309_s20, %s310_s21   ;;  %140 = vst.msk [vmem:[#allocation8 + $0x4] sm:$0xf] %vm122_vm7, %v138_v58 }
 0x126   :  { %166 = dma.vmem_to_hbm [thread:$0]  %s159_s16, 128, %s161_s19, [#allocation9], %s309_s20, %s309_s20, %s310_s21  }
 0x127   :  { %298 = dma.done.wait [#allocation4], 128  }
 0x128   :  { %299 = vsyncadd [#allocation4], 4294967168 }
 0x129   :  { %300 = dma.done.wait [#allocation9], 128  }
 0x12a   :  { %301 = vsyncadd [#allocation9], 4294967168 }
 0x12b   :  { %175 = vsyncpa [#allocation3], 1 }
 0x12c   :  { %176 = vsyncpa [#allocation6], 1 }
 0x12d   :  { %177 = vsyncpa [#allocation4], 1 }
 0x12e   :  { %178 = vsyncpa [#allocation9], 1 }

</bundles_post_ra>
